<compile_context>
chip_gen: v7x
topology: tpu7x:2x2x1
jax: 0.10.0
libtpu: 0.0.40
codegen_flags: <defaults>
</compile_context>

<pallas_src>
import math

import jax
import jax.numpy as jnp
from jax.experimental import pallas as pl
from jax.experimental.pallas import tpu as pltpu


def rwkv_timemix(x, params, *, n_head, ctx_len, block_b=None):
    B, T, C = x.shape
    A = params["key_w"].shape[0]                     # n_attn
    hs = A // n_head
    TT = ctx_len
    assert C % 2 == 0 and A % n_head == 0
    assert T <= TT, "sequence length must not exceed ctx_len"

    f32, bf16 = jnp.float32, jnp.bfloat16

    # ---- causal decay matrix via the pad/tile Toeplitz trick (no gather) ----
    # Built once; loaded into VMEM once by the kernel (constant index map).
    w = jnp.pad(params["time_w"], ((0, 0), (0, TT)))
    w = jnp.tile(w, (1, TT))
    w = w[:, :-TT].reshape(n_head, TT, 2 * TT - 1)
    w = w[:, :, TT - 1:]
    w = (w[:, :T, :T] * params["time_alpha"][:, :, :T]
         * params["time_beta"][:, :T, :]).astype(bf16)           # (H, T, T)

    # ---- time shift (ZeroPad2d((0,0,1,-1))) of first C/2 channels, fused with bf16 cast ----
    half = C // 2
    xs = jnp.concatenate(
        [jnp.pad(x[:, :, :half], ((0, 0), (1, 0), (0, 0)))[:, :T, :],
         x[:, :, half:]], axis=-1).astype(bf16)                  # (B, T, C)

    # batch blocking (item 8): several batches per grid step share the
    # resident decay / weight operands.
    if block_b is None:
        block_b = min(B, 2)
    pad_b = (-B) % block_b
    if pad_b:
        xs = jnp.pad(xs, ((0, pad_b), (0, 0), (0, 0)))
    Bp = B + pad_b
    nB = Bp // block_b
    Bb = block_b

    # ---- full-width projection weights (no per-head slabs) ----
    wk = params["key_w"].T.astype(bf16)                          # (C, A)
    wv = params["value_w"].T.astype(bf16)
    wr = params["recept_w"].T.astype(bf16)
    bk = params["key_b"].reshape(1, A).astype(f32)
    bv = params["value_b"].reshape(1, A).astype(f32)
    br = params["recept_b"].reshape(1, A).astype(f32)
    wo = params["output_w"].T.astype(bf16)                       # (A, C)
    bo = params["output_b"].reshape(1, C).astype(f32)
    gamma = params["time_gamma"][:T, :].astype(f32)              # (T, 1)

    def kernel(xs_ref, w_ref, wk_ref, bk_ref, wv_ref, bv_ref, wr_ref, br_ref,
               wo_ref, bo_ref, gamma_ref, o_ref):
        # causal mask built in-kernel (item 10): two iotas + compare, bf16.
        rows = jax.lax.broadcasted_iota(jnp.int32, (T, T), 0)
        lanes = jax.lax.broadcasted_iota(jnp.int32, (T, T), 1)
        tril = (rows >= lanes).astype(bf16)                      # (T, T)

        # full-width projections for ALL heads at once (item 2).
        xs2 = xs_ref[...].reshape(Bb * T, C)                     # bf16
        k = jnp.dot(xs2, wk_ref[...], preferred_element_type=f32) + bk_ref[...]
        v = jnp.dot(xs2, wv_ref[...], preferred_element_type=f32) + bv_ref[...]
        r = jnp.dot(xs2, wr_ref[...], preferred_element_type=f32) + br_ref[...]

        k = jnp.exp(jnp.clip(k, -60.0, 30.0))                    # (Bb*T, A) f32
        # bf16 kv trades ~1e-2 rel. error (mixed-magnitude rows) for MXU rate.
        kv = (k * v).astype(bf16)
        sig_r = jax.nn.sigmoid(r)                                # f32

        k3 = k.reshape(Bb, T, A)
        kv3 = kv.reshape(Bb, T, A)
        sig3 = sig_r.reshape(Bb, T, A)

        for b in range(Bb):
            # causal cumsum as two bf16 MXU passes (hi/lo split, item 4)
            # instead of one slow f32 MXU pass.
            k_hi = k3[b].astype(bf16)
            k_lo = (k3[b] - k_hi.astype(f32)).astype(bf16)
            sum_k = (jnp.dot(tril, k_hi, preferred_element_type=f32)
                     + jnp.dot(tril, k_lo, preferred_element_type=f32))
            mult = sig3[b] * pl.reciprocal(sum_k, approx=True)   # (T, A) f32

            # per-head decayed contraction against the VMEM-resident decay
            # slabs (static head slices -> no dynamic lane slicing).
            head_cols = []
            for h in range(n_head):
                kv_h = kv3[b, :, h * hs:(h + 1) * hs]            # (T, hs) bf16
                head_cols.append(
                    jnp.dot(w_ref[h], kv_h, preferred_element_type=f32))
            wkv = jnp.concatenate(head_cols, axis=-1)            # (T, A) f32
            rwkv = (wkv * mult).astype(bf16)

            # single full-K output projection (item 3): no per-head f32
            # accumulator read-modify-write.
            out_b = jnp.dot(rwkv, wo_ref[...], preferred_element_type=f32)
            out_b = (out_b + bo_ref[...]) * gamma_ref[...]       # (T, C)
            o_ref[b] = out_b.astype(o_ref.dtype)

    batch_map3 = lambda i: (i, 0, 0)
    const3 = lambda i: (0, 0, 0)
    const2 = lambda i: (0, 0)

    in_specs = [
        pl.BlockSpec((Bb, T, C), batch_map3),       # xs
        pl.BlockSpec((n_head, T, T), const3),       # decay, loaded once, resident
        pl.BlockSpec((C, A), const2),               # Wk (all heads)
        pl.BlockSpec((1, A), const2),               # bk
        pl.BlockSpec((C, A), const2),               # Wv
        pl.BlockSpec((1, A), const2),               # bv
        pl.BlockSpec((C, A), const2),               # Wr
        pl.BlockSpec((1, A), const2),               # br
        pl.BlockSpec((A, C), const2),               # Wo
        pl.BlockSpec((1, C), const2),               # bo
        pl.BlockSpec((T, 1), const2),               # gamma[:T]
    ]
    out_spec = pl.BlockSpec((Bb, T, C), batch_map3)

    # advisory cost hint for the XLA scheduler
    flops = Bp * (8 * T * C * A + 6 * T * T * A)
    transcendentals = Bp * 3 * T * A
    bytes_accessed = (xs.size * 2 + w.size * 2 + 4 * C * A * 2
                      + (3 * A + C + T) * 4 + Bp * T * C * x.dtype.itemsize)

    out = pl.pallas_call(
        kernel,
        out_shape=jax.ShapeDtypeStruct((Bp, T, C), x.dtype),
        grid=(nB,),
        in_specs=in_specs,
        out_specs=out_spec,
        compiler_params=pltpu.CompilerParams(
            dimension_semantics=("parallel",),
            vmem_limit_bytes=64 * 1024 * 1024),
        cost_estimate=pl.CostEstimate(
            flops=int(flops),
            transcendentals=int(transcendentals),
            bytes_accessed=int(bytes_accessed)),
    )(xs, w, wk, bk, wv, bv, wr, br, wo, bo, gamma)

    return out[:B] if pad_b else out


def init_params(key, n_embd, n_attn, n_head, ctx_len):
    ks = jax.random.split(key, 8)
    curve = jnp.array([-(ctx_len - 1 - i) for i in range(ctx_len)], jnp.float32)
    rows = []
    for h in range(n_head):
        if h < n_head - 1:
            decay = math.pow(ctx_len, -(h + 1) / (n_head - 1))
        else:
            decay = 0.0
        rows.append(jnp.exp(curve * decay))
    return dict(
        time_w=jnp.stack(rows).astype(jnp.float32),
        time_alpha=jnp.ones((n_head, 1, ctx_len), jnp.float32),
        time_beta=jnp.ones((n_head, ctx_len, 1), jnp.float32),
        time_gamma=jnp.ones((ctx_len, 1), jnp.float32),
        key_w=0.02 * jax.random.normal(ks[0], (n_attn, n_embd), jnp.float32),
        key_b=0.02 * jax.random.normal(ks[1], (n_attn,), jnp.float32),
        value_w=0.02 * jax.random.normal(ks[2], (n_attn, n_embd), jnp.float32),
        value_b=0.02 * jax.random.normal(ks[3], (n_attn,), jnp.float32),
        recept_w=0.02 * jax.random.normal(ks[4], (n_attn, n_embd), jnp.float32),
        recept_b=0.02 * jax.random.normal(ks[5], (n_attn,), jnp.float32),
        output_w=0.02 * jax.random.normal(ks[6], (n_embd, n_attn), jnp.float32),
        output_b=0.02 * jax.random.normal(ks[7], (n_embd,), jnp.float32),
    )


def ref_forward(x, params, *, n_head, ctx_len):
    """Pure-JAX f32 reference mirroring the PyTorch forward literally."""
    B, T, C = x.shape
    TT = ctx_len
    A = params["key_w"].shape[0]
    hs = A // n_head
    w = jnp.pad(params["time_w"], ((0, 0), (0, TT)))
    w = jnp.tile(w, (1, TT))
    w = w[:, :-TT].reshape(-1, TT, 2 * TT - 1)
    w = w[:, :, TT - 1:]
    w = w[:, :T, :T] * params["time_alpha"][:, :, :T] * params["time_beta"][:, :T, :]
    half = C // 2
    xs = jnp.concatenate(
        [jnp.pad(x[:, :, :half], ((0, 0), (1, 0), (0, 0)))[:, :T, :],
         x[:, :, half:]], axis=-1)
    k = xs @ params["key_w"].T + params["key_b"]
    v = xs @ params["value_w"].T + params["value_b"]
    r = xs @ params["recept_w"].T + params["recept_b"]
    k = jnp.exp(jnp.clip(k, -60.0, 30.0))
    sum_k = jnp.cumsum(k, axis=1)
    kv = (k * v).reshape(B, T, n_head, hs)
    wkv = jnp.einsum('htu,buhc->bthc', w, kv).reshape(B, T, -1)
    rwkv = jax.nn.sigmoid(r) * wkv / sum_k
    rwkv = rwkv @ params["output_w"].T + params["output_b"]
    return rwkv * params["time_gamma"][:T, :]


if __name__ == "__main__":
    # small, module-consistent shapes
    B, T = 2, 8
    n_embd, n_attn, n_head, ctx_len = 32, 32, 4, 8

    key = jax.random.PRNGKey(0)
    kx, kp = jax.random.split(key)
    x = jax.random.normal(kx, (B, T, n_embd), jnp.float32)
    params = init_params(kp, n_embd, n_attn, n_head, ctx_len)

    out = rwkv_timemix(x, params, n_head=n_head, ctx_len=ctx_len)
    out = jax.block_until_ready(out)

    ref = ref_forward(x, params, n_head=n_head, ctx_len=ctx_len)
    assert out.shape == (B, T, n_embd)
    # tolerance accounts for bf16 MXU operands + approx reciprocal vs f32 reference
    err = jnp.max(jnp.abs(out - ref))
    assert jnp.allclose(out, ref, atol=2e-3, rtol=2e-2), f"max abs err {err}"
    print("KERNEL_OK")
</pallas_src>

<mosaic_0001>
module attributes {stable_mosaic.version = 11 : i64} {
  func.func @kernel(%arg0: i32, %arg1: memref<2x8x32xbf16, #tpu.memory_space<vmem>>, %arg2: memref<4x8x8xbf16, #tpu.memory_space<vmem>>, %arg3: memref<32x32xbf16, #tpu.memory_space<vmem>>, %arg4: memref<1x32xf32, #tpu.memory_space<vmem>>, %arg5: memref<32x32xbf16, #tpu.memory_space<vmem>>, %arg6: memref<1x32xf32, #tpu.memory_space<vmem>>, %arg7: memref<32x32xbf16, #tpu.memory_space<vmem>>, %arg8: memref<1x32xf32, #tpu.memory_space<vmem>>, %arg9: memref<32x32xbf16, #tpu.memory_space<vmem>>, %arg10: memref<1x32xf32, #tpu.memory_space<vmem>>, %arg11: memref<8x1xf32, #tpu.memory_space<vmem>>, %arg12: memref<2x8x32xf32, #tpu.memory_space<vmem>>) attributes {dimension_semantics = [#tpu.dimension_semantics<parallel>], iteration_bounds = array<i64: 1>, scalar_prefetch = 0 : i64, scratch_operands = 0 : i64, tpu.core_type = #tpu.core_type<tc>, window_params = [{transform_indices = @transform_0, window_bounds = array<i64: 2, 8, 32>}, {pipeline_mode = #tpu.pipeline_mode<synchronous>, transform_indices = @transform_1, window_bounds = array<i64: 4, 8, 8>}, {pipeline_mode = #tpu.pipeline_mode<synchronous>, transform_indices = @transform_2, window_bounds = array<i64: 32, 32>}, {pipeline_mode = #tpu.pipeline_mode<synchronous>, transform_indices = @transform_3, window_bounds = array<i64: 1, 32>}, {pipeline_mode = #tpu.pipeline_mode<synchronous>, transform_indices = @transform_4, window_bounds = array<i64: 32, 32>}, {pipeline_mode = #tpu.pipeline_mode<synchronous>, transform_indices = @transform_5, window_bounds = array<i64: 1, 32>}, {pipeline_mode = #tpu.pipeline_mode<synchronous>, transform_indices = @transform_6, window_bounds = array<i64: 32, 32>}, {pipeline_mode = #tpu.pipeline_mode<synchronous>, transform_indices = @transform_7, window_bounds = array<i64: 1, 32>}, {pipeline_mode = #tpu.pipeline_mode<synchronous>, transform_indices = @transform_8, window_bounds = array<i64: 32, 32>}, {pipeline_mode = #tpu.pipeline_mode<synchronous>, transform_indices = @transform_9, window_bounds = array<i64: 1, 32>}, {pipeline_mode = #tpu.pipeline_mode<synchronous>, transform_indices = @transform_10, window_bounds = array<i64: 8, 1>}, {transform_indices = @transform_11, window_bounds = array<i64: 2, 8, 32>}]} {
    %0 = tpu.iota {dimensions = array<i32: 0>} : vector<8x8xi32>
    %1 = tpu.iota {dimensions = array<i32: 1>} : vector<8x8xi32>
    %2 = arith.cmpi sge, %0, %1 : vector<8x8xi32>
    %3 = arith.extui %2 : vector<8x8xi1> to vector<8x8xi32>
    %4 = arith.sitofp %3 : vector<8x8xi32> to vector<8x8xf32>
    %5 = arith.truncf %4 : vector<8x8xf32> to vector<8x8xbf16>
    %c0 = arith.constant 0 : index
    %c0_0 = arith.constant 0 : index
    %c0_1 = arith.constant 0 : index
    %6 = vector.load %arg1[%c0, %c0_0, %c0_1] : memref<2x8x32xbf16, #tpu.memory_space<vmem>>, vector<2x8x32xbf16>
    %7 = vector.shape_cast %6 : vector<2x8x32xbf16> to vector<16x32xbf16>
    %c0_2 = arith.constant 0 : index
    %c0_3 = arith.constant 0 : index
    %8 = vector.load %arg3[%c0_2, %c0_3] : memref<32x32xbf16, #tpu.memory_space<vmem>>, vector<32x32xbf16>
    %cst = arith.constant dense<0.000000e+00> : vector<16x32xf32>
    %9 = tpu.matmul %7, %8, %cst {dimension_numbers = #tpu.dot_dimension_numbers<[1], [0], [0], [1], [0, 0, 1, 1], [], []>} : vector<16x32xbf16>, vector<32x32xbf16>, vector<16x32xf32> -> vector<16x32xf32>
    %c0_4 = arith.constant 0 : index
    %c0_5 = arith.constant 0 : index
    %10 = vector.load %arg4[%c0_4, %c0_5] : memref<1x32xf32, #tpu.memory_space<vmem>>, vector<1x32xf32>
    %11 = vector.broadcast %10 : vector<1x32xf32> to vector<16x32xf32>
    %12 = arith.addf %9, %11 : vector<16x32xf32>
    %c0_6 = arith.constant 0 : index
    %c0_7 = arith.constant 0 : index
    %13 = vector.load %arg5[%c0_6, %c0_7] : memref<32x32xbf16, #tpu.memory_space<vmem>>, vector<32x32xbf16>
    %cst_8 = arith.constant dense<0.000000e+00> : vector<16x32xf32>
    %14 = tpu.matmul %7, %13, %cst_8 {dimension_numbers = #tpu.dot_dimension_numbers<[1], [0], [0], [1], [0, 0, 1, 1], [], []>} : vector<16x32xbf16>, vector<32x32xbf16>, vector<16x32xf32> -> vector<16x32xf32>
    %c0_9 = arith.constant 0 : index
    %c0_10 = arith.constant 0 : index
    %15 = vector.load %arg6[%c0_9, %c0_10] : memref<1x32xf32, #tpu.memory_space<vmem>>, vector<1x32xf32>
    %16 = vector.broadcast %15 : vector<1x32xf32> to vector<16x32xf32>
    %17 = arith.addf %14, %16 : vector<16x32xf32>
    %c0_11 = arith.constant 0 : index
    %c0_12 = arith.constant 0 : index
    %18 = vector.load %arg7[%c0_11, %c0_12] : memref<32x32xbf16, #tpu.memory_space<vmem>>, vector<32x32xbf16>
    %cst_13 = arith.constant dense<0.000000e+00> : vector<16x32xf32>
    %19 = tpu.matmul %7, %18, %cst_13 {dimension_numbers = #tpu.dot_dimension_numbers<[1], [0], [0], [1], [0, 0, 1, 1], [], []>} : vector<16x32xbf16>, vector<32x32xbf16>, vector<16x32xf32> -> vector<16x32xf32>
    %c0_14 = arith.constant 0 : index
    %c0_15 = arith.constant 0 : index
    %20 = vector.load %arg8[%c0_14, %c0_15] : memref<1x32xf32, #tpu.memory_space<vmem>>, vector<1x32xf32>
    %21 = vector.broadcast %20 : vector<1x32xf32> to vector<16x32xf32>
    %22 = arith.addf %19, %21 : vector<16x32xf32>
    %cst_16 = arith.constant -6.000000e+01 : f32
    %cst_17 = arith.constant 3.000000e+01 : f32
    %23 = vector.broadcast %cst_16 : f32 to vector<16x32xf32>
    %24 = arith.maximumf %23, %12 : vector<16x32xf32>
    %25 = vector.broadcast %cst_17 : f32 to vector<16x32xf32>
    %26 = arith.minimumf %25, %24 : vector<16x32xf32>
    %27 = math.exp %26 : vector<16x32xf32>
    %28 = arith.mulf %27, %17 : vector<16x32xf32>
    %29 = arith.truncf %28 : vector<16x32xf32> to vector<16x32xbf16>
    %30 = arith.negf %22 : vector<16x32xf32>
    %31 = math.exp %30 : vector<16x32xf32>
    %cst_18 = arith.constant 1.000000e+00 : f32
    %32 = vector.broadcast %cst_18 : f32 to vector<16x32xf32>
    %33 = arith.addf %32, %31 : vector<16x32xf32>
    %34 = arith.divf %32, %33 : vector<16x32xf32>
    %35 = vector.shape_cast %27 : vector<16x32xf32> to vector<2x8x32xf32>
    %36 = vector.shape_cast %29 : vector<16x32xbf16> to vector<2x8x32xbf16>
    %37 = vector.shape_cast %34 : vector<16x32xf32> to vector<2x8x32xf32>
    %38 = vector.extract_strided_slice %35 {offsets = [0, 0, 0], sizes = [1, 8, 32], strides = [1, 1, 1]} : vector<2x8x32xf32> to vector<1x8x32xf32>
    %39 = vector.shape_cast %38 : vector<1x8x32xf32> to vector<8x32xf32>
    %40 = arith.truncf %39 : vector<8x32xf32> to vector<8x32xbf16>
    %41 = vector.extract_strided_slice %35 {offsets = [0, 0, 0], sizes = [1, 8, 32], strides = [1, 1, 1]} : vector<2x8x32xf32> to vector<1x8x32xf32>
    %42 = vector.shape_cast %41 : vector<1x8x32xf32> to vector<8x32xf32>
    %43 = arith.extf %40 : vector<8x32xbf16> to vector<8x32xf32>
    %44 = arith.subf %42, %43 : vector<8x32xf32>
    %45 = arith.truncf %44 : vector<8x32xf32> to vector<8x32xbf16>
    %cst_19 = arith.constant dense<0.000000e+00> : vector<8x32xf32>
    %46 = tpu.matmul %5, %40, %cst_19 {dimension_numbers = #tpu.dot_dimension_numbers<[1], [0], [0], [1], [0, 0, 1, 1], [], []>} : vector<8x8xbf16>, vector<8x32xbf16>, vector<8x32xf32> -> vector<8x32xf32>
    %cst_20 = arith.constant dense<0.000000e+00> : vector<8x32xf32>
    %47 = tpu.matmul %5, %45, %cst_20 {dimension_numbers = #tpu.dot_dimension_numbers<[1], [0], [0], [1], [0, 0, 1, 1], [], []>} : vector<8x8xbf16>, vector<8x32xbf16>, vector<8x32xf32> -> vector<8x32xf32>
    %48 = arith.addf %46, %47 : vector<8x32xf32>
    %49 = vector.extract_strided_slice %37 {offsets = [0, 0, 0], sizes = [1, 8, 32], strides = [1, 1, 1]} : vector<2x8x32xf32> to vector<1x8x32xf32>
    %50 = vector.shape_cast %49 : vector<1x8x32xf32> to vector<8x32xf32>
    %51 = tpu.reciprocal %48 {approx = true} : vector<8x32xf32> -> vector<8x32xf32>
    %52 = arith.mulf %50, %51 : vector<8x32xf32>
    %53 = vector.extract_strided_slice %36 {offsets = [0, 0, 0], sizes = [1, 8, 8], strides = [1, 1, 1]} : vector<2x8x32xbf16> to vector<1x8x8xbf16>
    %54 = vector.shape_cast %53 : vector<1x8x8xbf16> to vector<8x8xbf16>
    %c0_21 = arith.constant 0 : index
    %c0_22 = arith.constant 0 : index
    %c0_23 = arith.constant 0 : index
    %55 = vector.load %arg2[%c0_21, %c0_22, %c0_23] : memref<4x8x8xbf16, #tpu.memory_space<vmem>>, vector<1x8x8xbf16>
    %56 = vector.shape_cast %55 : vector<1x8x8xbf16> to vector<8x8xbf16>
    %cst_24 = arith.constant dense<0.000000e+00> : vector<8x8xf32>
    %57 = tpu.matmul %56, %54, %cst_24 {dimension_numbers = #tpu.dot_dimension_numbers<[1], [0], [0], [1], [0, 0, 1, 1], [], []>} : vector<8x8xbf16>, vector<8x8xbf16>, vector<8x8xf32> -> vector<8x8xf32>
    %58 = vector.extract_strided_slice %36 {offsets = [0, 0, 8], sizes = [1, 8, 8], strides = [1, 1, 1]} : vector<2x8x32xbf16> to vector<1x8x8xbf16>
    %59 = vector.shape_cast %58 : vector<1x8x8xbf16> to vector<8x8xbf16>
    %c1 = arith.constant 1 : index
    %c0_25 = arith.constant 0 : index
    %c0_26 = arith.constant 0 : index
    %60 = vector.load %arg2[%c1, %c0_25, %c0_26] : memref<4x8x8xbf16, #tpu.memory_space<vmem>>, vector<1x8x8xbf16>
    %61 = vector.shape_cast %60 : vector<1x8x8xbf16> to vector<8x8xbf16>
    %cst_27 = arith.constant dense<0.000000e+00> : vector<8x8xf32>
    %62 = tpu.matmul %61, %59, %cst_27 {dimension_numbers = #tpu.dot_dimension_numbers<[1], [0], [0], [1], [0, 0, 1, 1], [], []>} : vector<8x8xbf16>, vector<8x8xbf16>, vector<8x8xf32> -> vector<8x8xf32>
    %63 = vector.extract_strided_slice %36 {offsets = [0, 0, 16], sizes = [1, 8, 8], strides = [1, 1, 1]} : vector<2x8x32xbf16> to vector<1x8x8xbf16>
    %64 = vector.shape_cast %63 : vector<1x8x8xbf16> to vector<8x8xbf16>
    %c2 = arith.constant 2 : index
    %c0_28 = arith.constant 0 : index
    %c0_29 = arith.constant 0 : index
    %65 = vector.load %arg2[%c2, %c0_28, %c0_29] : memref<4x8x8xbf16, #tpu.memory_space<vmem>>, vector<1x8x8xbf16>
    %66 = vector.shape_cast %65 : vector<1x8x8xbf16> to vector<8x8xbf16>
    %cst_30 = arith.constant dense<0.000000e+00> : vector<8x8xf32>
    %67 = tpu.matmul %66, %64, %cst_30 {dimension_numbers = #tpu.dot_dimension_numbers<[1], [0], [0], [1], [0, 0, 1, 1], [], []>} : vector<8x8xbf16>, vector<8x8xbf16>, vector<8x8xf32> -> vector<8x8xf32>
    %68 = vector.extract_strided_slice %36 {offsets = [0, 0, 24], sizes = [1, 8, 8], strides = [1, 1, 1]} : vector<2x8x32xbf16> to vector<1x8x8xbf16>
    %69 = vector.shape_cast %68 : vector<1x8x8xbf16> to vector<8x8xbf16>
    %c3 = arith.constant 3 : index
    %c0_31 = arith.constant 0 : index
    %c0_32 = arith.constant 0 : index
    %70 = vector.load %arg2[%c3, %c0_31, %c0_32] : memref<4x8x8xbf16, #tpu.memory_space<vmem>>, vector<1x8x8xbf16>
    %71 = vector.shape_cast %70 : vector<1x8x8xbf16> to vector<8x8xbf16>
    %cst_33 = arith.constant dense<0.000000e+00> : vector<8x8xf32>
    %72 = tpu.matmul %71, %69, %cst_33 {dimension_numbers = #tpu.dot_dimension_numbers<[1], [0], [0], [1], [0, 0, 1, 1], [], []>} : vector<8x8xbf16>, vector<8x8xbf16>, vector<8x8xf32> -> vector<8x8xf32>
    %73 = tpu.concatenate %57, %62, %67, %72 in 1 : vector<8x8xf32>, vector<8x8xf32>, vector<8x8xf32>, vector<8x8xf32> -> vector<8x32xf32>
    %74 = arith.mulf %73, %52 : vector<8x32xf32>
    %75 = arith.truncf %74 : vector<8x32xf32> to vector<8x32xbf16>
    %c0_34 = arith.constant 0 : index
    %c0_35 = arith.constant 0 : index
    %76 = vector.load %arg9[%c0_34, %c0_35] : memref<32x32xbf16, #tpu.memory_space<vmem>>, vector<32x32xbf16>
    %cst_36 = arith.constant dense<0.000000e+00> : vector<8x32xf32>
    %77 = tpu.matmul %75, %76, %cst_36 {dimension_numbers = #tpu.dot_dimension_numbers<[1], [0], [0], [1], [0, 0, 1, 1], [], []>} : vector<8x32xbf16>, vector<32x32xbf16>, vector<8x32xf32> -> vector<8x32xf32>
    %c0_37 = arith.constant 0 : index
    %c0_38 = arith.constant 0 : index
    %78 = vector.load %arg10[%c0_37, %c0_38] : memref<1x32xf32, #tpu.memory_space<vmem>>, vector<1x32xf32>
    %79 = vector.broadcast %78 : vector<1x32xf32> to vector<8x32xf32>
    %80 = arith.addf %77, %79 : vector<8x32xf32>
    %c0_39 = arith.constant 0 : index
    %c0_40 = arith.constant 0 : index
    %81 = vector.load %arg11[%c0_39, %c0_40] : memref<8x1xf32, #tpu.memory_space<vmem>>, vector<8x1xf32>
    %82 = vector.broadcast %81 : vector<8x1xf32> to vector<8x32xf32>
    %83 = arith.mulf %80, %82 : vector<8x32xf32>
    %c0_41 = arith.constant 0 : index
    %c0_42 = arith.constant 0 : index
    %c0_43 = arith.constant 0 : index
    %84 = vector.load %arg12[%c0_41, %c0_42, %c0_43] : memref<2x8x32xf32, #tpu.memory_space<vmem>>, vector<1x8x32xf32>
    %85 = vector.shape_cast %84 : vector<1x8x32xf32> to vector<8x32xf32>
    %86 = vector.shape_cast %83 : vector<8x32xf32> to vector<1x8x32xf32>
    tpu.vector_store %arg12[%c0_41, %c0_42, %c0_43], %86 {strides = array<i32>} : memref<2x8x32xf32, #tpu.memory_space<vmem>>, vector<1x8x32xf32>,
    %87 = vector.extract_strided_slice %35 {offsets = [1, 0, 0], sizes = [1, 8, 32], strides = [1, 1, 1]} : vector<2x8x32xf32> to vector<1x8x32xf32>
    %88 = vector.shape_cast %87 : vector<1x8x32xf32> to vector<8x32xf32>
    %89 = arith.truncf %88 : vector<8x32xf32> to vector<8x32xbf16>
    %90 = vector.extract_strided_slice %35 {offsets = [1, 0, 0], sizes = [1, 8, 32], strides = [1, 1, 1]} : vector<2x8x32xf32> to vector<1x8x32xf32>
    %91 = vector.shape_cast %90 : vector<1x8x32xf32> to vector<8x32xf32>
    %92 = arith.extf %89 : vector<8x32xbf16> to vector<8x32xf32>
    %93 = arith.subf %91, %92 : vector<8x32xf32>
    %94 = arith.truncf %93 : vector<8x32xf32> to vector<8x32xbf16>
    %cst_44 = arith.constant dense<0.000000e+00> : vector<8x32xf32>
    %95 = tpu.matmul %5, %89, %cst_44 {dimension_numbers = #tpu.dot_dimension_numbers<[1], [0], [0], [1], [0, 0, 1, 1], [], []>} : vector<8x8xbf16>, vector<8x32xbf16>, vector<8x32xf32> -> vector<8x32xf32>
    %cst_45 = arith.constant dense<0.000000e+00> : vector<8x32xf32>
    %96 = tpu.matmul %5, %94, %cst_45 {dimension_numbers = #tpu.dot_dimension_numbers<[1], [0], [0], [1], [0, 0, 1, 1], [], []>} : vector<8x8xbf16>, vector<8x32xbf16>, vector<8x32xf32> -> vector<8x32xf32>
    %97 = arith.addf %95, %96 : vector<8x32xf32>
    %98 = vector.extract_strided_slice %37 {offsets = [1, 0, 0], sizes = [1, 8, 32], strides = [1, 1, 1]} : vector<2x8x32xf32> to vector<1x8x32xf32>
    %99 = vector.shape_cast %98 : vector<1x8x32xf32> to vector<8x32xf32>
    %100 = tpu.reciprocal %97 {approx = true} : vector<8x32xf32> -> vector<8x32xf32>
    %101 = arith.mulf %99, %100 : vector<8x32xf32>
    %102 = vector.extract_strided_slice %36 {offsets = [1, 0, 0], sizes = [1, 8, 8], strides = [1, 1, 1]} : vector<2x8x32xbf16> to vector<1x8x8xbf16>
    %103 = vector.shape_cast %102 : vector<1x8x8xbf16> to vector<8x8xbf16>
    %c0_46 = arith.constant 0 : index
    %c0_47 = arith.constant 0 : index
    %c0_48 = arith.constant 0 : index
    %104 = vector.load %arg2[%c0_46, %c0_47, %c0_48] : memref<4x8x8xbf16, #tpu.memory_space<vmem>>, vector<1x8x8xbf16>
    %105 = vector.shape_cast %104 : vector<1x8x8xbf16> to vector<8x8xbf16>
    %cst_49 = arith.constant dense<0.000000e+00> : vector<8x8xf32>
    %106 = tpu.matmul %105, %103, %cst_49 {dimension_numbers = #tpu.dot_dimension_numbers<[1], [0], [0], [1], [0, 0, 1, 1], [], []>} : vector<8x8xbf16>, vector<8x8xbf16>, vector<8x8xf32> -> vector<8x8xf32>
    %107 = vector.extract_strided_slice %36 {offsets = [1, 0, 8], sizes = [1, 8, 8], strides = [1, 1, 1]} : vector<2x8x32xbf16> to vector<1x8x8xbf16>
    %108 = vector.shape_cast %107 : vector<1x8x8xbf16> to vector<8x8xbf16>
    %c1_50 = arith.constant 1 : index
    %c0_51 = arith.constant 0 : index
    %c0_52 = arith.constant 0 : index
    %109 = vector.load %arg2[%c1_50, %c0_51, %c0_52] : memref<4x8x8xbf16, #tpu.memory_space<vmem>>, vector<1x8x8xbf16>
    %110 = vector.shape_cast %109 : vector<1x8x8xbf16> to vector<8x8xbf16>
    %cst_53 = arith.constant dense<0.000000e+00> : vector<8x8xf32>
    %111 = tpu.matmul %110, %108, %cst_53 {dimension_numbers = #tpu.dot_dimension_numbers<[1], [0], [0], [1], [0, 0, 1, 1], [], []>} : vector<8x8xbf16>, vector<8x8xbf16>, vector<8x8xf32> -> vector<8x8xf32>
    %112 = vector.extract_strided_slice %36 {offsets = [1, 0, 16], sizes = [1, 8, 8], strides = [1, 1, 1]} : vector<2x8x32xbf16> to vector<1x8x8xbf16>
    %113 = vector.shape_cast %112 : vector<1x8x8xbf16> to vector<8x8xbf16>
    %c2_54 = arith.constant 2 : index
    %c0_55 = arith.constant 0 : index
    %c0_56 = arith.constant 0 : index
    %114 = vector.load %arg2[%c2_54, %c0_55, %c0_56] : memref<4x8x8xbf16, #tpu.memory_space<vmem>>, vector<1x8x8xbf16>
    %115 = vector.shape_cast %114 : vector<1x8x8xbf16> to vector<8x8xbf16>
    %cst_57 = arith.constant dense<0.000000e+00> : vector<8x8xf32>
    %116 = tpu.matmul %115, %113, %cst_57 {dimension_numbers = #tpu.dot_dimension_numbers<[1], [0], [0], [1], [0, 0, 1, 1], [], []>} : vector<8x8xbf16>, vector<8x8xbf16>, vector<8x8xf32> -> vector<8x8xf32>
    %117 = vector.extract_strided_slice %36 {offsets = [1, 0, 24], sizes = [1, 8, 8], strides = [1, 1, 1]} : vector<2x8x32xbf16> to vector<1x8x8xbf16>
    %118 = vector.shape_cast %117 : vector<1x8x8xbf16> to vector<8x8xbf16>
    %c3_58 = arith.constant 3 : index
    %c0_59 = arith.constant 0 : index
    %c0_60 = arith.constant 0 : index
    %119 = vector.load %arg2[%c3_58, %c0_59, %c0_60] : memref<4x8x8xbf16, #tpu.memory_space<vmem>>, vector<1x8x8xbf16>
    %120 = vector.shape_cast %119 : vector<1x8x8xbf16> to vector<8x8xbf16>
    %cst_61 = arith.constant dense<0.000000e+00> : vector<8x8xf32>
    %121 = tpu.matmul %120, %118, %cst_61 {dimension_numbers = #tpu.dot_dimension_numbers<[1], [0], [0], [1], [0, 0, 1, 1], [], []>} : vector<8x8xbf16>, vector<8x8xbf16>, vector<8x8xf32> -> vector<8x8xf32>
    %122 = tpu.concatenate %106, %111, %116, %121 in 1 : vector<8x8xf32>, vector<8x8xf32>, vector<8x8xf32>, vector<8x8xf32> -> vector<8x32xf32>
    %123 = arith.mulf %122, %101 : vector<8x32xf32>
    %124 = arith.truncf %123 : vector<8x32xf32> to vector<8x32xbf16>
    %c0_62 = arith.constant 0 : index
    %c0_63 = arith.constant 0 : index
    %125 = vector.load %arg9[%c0_62, %c0_63] : memref<32x32xbf16, #tpu.memory_space<vmem>>, vector<32x32xbf16>
    %cst_64 = arith.constant dense<0.000000e+00> : vector<8x32xf32>
    %126 = tpu.matmul %124, %125, %cst_64 {dimension_numbers = #tpu.dot_dimension_numbers<[1], [0], [0], [1], [0, 0, 1, 1], [], []>} : vector<8x32xbf16>, vector<32x32xbf16>, vector<8x32xf32> -> vector<8x32xf32>
    %c0_65 = arith.constant 0 : index
    %c0_66 = arith.constant 0 : index
    %127 = vector.load %arg10[%c0_65, %c0_66] : memref<1x32xf32, #tpu.memory_space<vmem>>, vector<1x32xf32>
    %128 = vector.broadcast %127 : vector<1x32xf32> to vector<8x32xf32>
    %129 = arith.addf %126, %128 : vector<8x32xf32>
    %c0_67 = arith.constant 0 : index
    %c0_68 = arith.constant 0 : index
    %130 = vector.load %arg11[%c0_67, %c0_68] : memref<8x1xf32, #tpu.memory_space<vmem>>, vector<8x1xf32>
    %131 = vector.broadcast %130 : vector<8x1xf32> to vector<8x32xf32>
    %132 = arith.mulf %129, %131 : vector<8x32xf32>
    %c1_69 = arith.constant 1 : index
    %c0_70 = arith.constant 0 : index
    %c0_71 = arith.constant 0 : index
    %133 = vector.load %arg12[%c1_69, %c0_70, %c0_71] : memref<2x8x32xf32, #tpu.memory_space<vmem>>, vector<1x8x32xf32>
    %134 = vector.shape_cast %133 : vector<1x8x32xf32> to vector<8x32xf32>
    %135 = vector.shape_cast %132 : vector<8x32xf32> to vector<1x8x32xf32>
    tpu.vector_store %arg12[%c1_69, %c0_70, %c0_71], %135 {strides = array<i32>} : memref<2x8x32xf32, #tpu.memory_space<vmem>>, vector<1x8x32xf32>,
    return
  }
  func.func @transform_0(%arg0: i32) -> (i32, i32, i32) {
    %c0_i32 = arith.constant 0 : i32
    %c0_i32_0 = arith.constant 0 : i32
    %c0_i32_1 = arith.constant 0 : i32
    return %arg0, %c0_i32, %c0_i32_0 : i32, i32, i32
  }
  func.func @transform_1(%arg0: i32) -> (i32, i32, i32) {
    %c0_i32 = arith.constant 0 : i32
    %c0_i32_0 = arith.constant 0 : i32
    %c0_i32_1 = arith.constant 0 : i32
    %c0_i32_2 = arith.constant 0 : i32
    return %c0_i32, %c0_i32_0, %c0_i32_1 : i32, i32, i32
  }
  func.func @transform_2(%arg0: i32) -> (i32, i32) {
    %c0_i32 = arith.constant 0 : i32
    %c0_i32_0 = arith.constant 0 : i32
    %c0_i32_1 = arith.constant 0 : i32
    return %c0_i32, %c0_i32_0 : i32, i32
  }
  func.func @transform_3(%arg0: i32) -> (i32, i32) {
    %c0_i32 = arith.constant 0 : i32
    %c0_i32_0 = arith.constant 0 : i32
    %c0_i32_1 = arith.constant 0 : i32
    return %c0_i32, %c0_i32_0 : i32, i32
  }
  func.func @transform_4(%arg0: i32) -> (i32, i32) {
    %c0_i32 = arith.constant 0 : i32
    %c0_i32_0 = arith.constant 0 : i32
    %c0_i32_1 = arith.constant 0 : i32
    return %c0_i32, %c0_i32_0 : i32, i32
  }
  func.func @transform_5(%arg0: i32) -> (i32, i32) {
    %c0_i32 = arith.constant 0 : i32
    %c0_i32_0 = arith.constant 0 : i32
    %c0_i32_1 = arith.constant 0 : i32
    return %c0_i32, %c0_i32_0 : i32, i32
  }
  func.func @transform_6(%arg0: i32) -> (i32, i32) {
    %c0_i32 = arith.constant 0 : i32
    %c0_i32_0 = arith.constant 0 : i32
    %c0_i32_1 = arith.constant 0 : i32
    return %c0_i32, %c0_i32_0 : i32, i32
  }
  func.func @transform_7(%arg0: i32) -> (i32, i32) {
    %c0_i32 = arith.constant 0 : i32
    %c0_i32_0 = arith.constant 0 : i32
    %c0_i32_1 = arith.constant 0 : i32
    return %c0_i32, %c0_i32_0 : i32, i32
  }
  func.func @transform_8(%arg0: i32) -> (i32, i32) {
    %c0_i32 = arith.constant 0 : i32
    %c0_i32_0 = arith.constant 0 : i32
    %c0_i32_1 = arith.constant 0 : i32
    return %c0_i32, %c0_i32_0 : i32, i32
  }
  func.func @transform_9(%arg0: i32) -> (i32, i32) {
    %c0_i32 = arith.constant 0 : i32
    %c0_i32_0 = arith.constant 0 : i32
    %c0_i32_1 = arith.constant 0 : i32
    return %c0_i32, %c0_i32_0 : i32, i32
  }
  func.func @transform_10(%arg0: i32) -> (i32, i32) {
    %c0_i32 = arith.constant 0 : i32
    %c0_i32_0 = arith.constant 0 : i32
    %c0_i32_1 = arith.constant 0 : i32
    return %c0_i32, %c0_i32_0 : i32, i32
  }
  func.func @transform_11(%arg0: i32) -> (i32, i32, i32) {
    %c0_i32 = arith.constant 0 : i32
    %c0_i32_0 = arith.constant 0 : i32
    %c0_i32_1 = arith.constant 0 : i32
    return %arg0, %c0_i32, %c0_i32_0 : i32, i32, i32
  }
}

</mosaic_0001>

<bundles_post_ra>
// kernel: tpu_custom_call.1
= control target key start
LH: loop header
LB: loop body
LE: loop exit
PB: predicated region body
PF: predicated region fallthrough
CT: control target
= control target key end

     0   :  { %16 = vsyncpa [#allocation3], 0  ;;  %s2127_s0 = inlined_call_operand.hbm [shape: bf16[2,8,32], index: 0, kind: input, shape index: {}]   ;;  %s2128_s1 = inlined_call_operand.hbm [shape: bf16[4,8,8], index: 1, kind: input, shape index: {}]   ;;  %s2129_s2 = inlined_call_operand.hbm [shape: bf16[32,32], index: 2, kind: input, shape index: {}]   ;;  %s2130_s3 = inlined_call_operand.hbm [shape: f32[1,32], index: 3, kind: input, shape index: {}]   ;;  %s2131_s4 = inlined_call_operand.hbm [shape: bf16[32,32], index: 4, kind: input, shape index: {}]   ;;  %s2132_s5 = inlined_call_operand.hbm [shape: f32[1,32], index: 5, kind: input, shape index: {}]   ;;  %s2133_s6 = inlined_call_operand.hbm [shape: bf16[32,32], index: 6, kind: input, shape index: {}]   ;;  %s2134_s7 = inlined_call_operand.hbm [shape: f32[1,32], index: 7, kind: input, shape index: {}]   ;;  %s2135_s8 = inlined_call_operand.hbm [shape: bf16[32,32], index: 8, kind: input, shape index: {}]   ;;  %s2136_s9 = inlined_call_operand.hbm [shape: f32[1,32], index: 9, kind: input, shape index: {}]   ;;  %s2137_s10 = inlined_call_operand.hbm [shape: f32[8,1], index: 10, kind: input, shape index: {}]   ;;  %s2138_s11 = inlined_call_operand.hbm [shape: f32[2,8,32], index: 11, kind: output, shape index: {}]  }
   0x1   :  { %17 = vsyncpa [#allocation6], 0 }
   0x2   :  { %18 = vsyncpa [#allocation9], 0 }
   0x3   :  { %19 = vsyncpa [#allocation12], 0 }
   0x4   :  { %20 = vsyncpa [#allocation15], 0 }
   0x5   :  { %21 = vsyncpa [#allocation18], 0 }
   0x6   :  { %22 = vsyncpa [#allocation4], 0  ;;  %s1735_s17 = smov [#allocation5]   ;;  %s1736_s19 = smov [#allocation8]  }
   0x7   :  { %s40_s18 = sshll.u32 %s1735_s17, 4  ;;  %s65_s20 = sshll.u32 %s1736_s19, 4  ;;  %s41_s18 = int_to_ptr.vmem [resolvable:$true] %s40_s18  ;;  %s1819_s20 = int_to_ptr.vmem [resolvable:$true] %s65_s20 }
   0x8   :  { %s1457_s23 = scalar_lea.hbm %s2128_s1, 256 }
   0x9   :  { %p1458_p0 = scmp.ne.s32.totalorder %s2128_s1, %s1457_s23  ;;  %p1461_p1 = scmp.lt.u32.totalorder %s1457_s23, %s2128_s1 }
   0xb   :  { %p1463_p2 = pnand %p1461_p1, %p1458_p0 }
   0xd   :  { %1466 = shalt.err (!%p1463_p2)
}
   0xe   :  { %s1467_s28 = scalar_lea.vmem %s41_s18, 256  ;;  %p1472_p4 = scmp.lt.s32.totalorder %s41_s18, %s41_s18 }
   0xf   :  { %p1468_p3 = scmp.ne.s32.totalorder %s41_s18, %s1467_s28  ;;  %p1473_p5 = scmp.lt.s32.totalorder %s1467_s28, %s1467_s28 }
  0x11   :  { %p1474_p6 = por %p1473_p5, %p1472_p4 }
  0x13   :  { %p1475_p7 = pnand %p1474_p6, %p1468_p3 }
  0x15   :  { %1478 = shalt.err (!%p1475_p7)
}
  0x16   :  { %s1737_s29 = smov 64   ;;  %s1738_s30 = smov 4  }
  0x17   :  { %46 = dma.hbm_to_vmem [thread:$0]  %s2128_s1, 256, %s41_s18, [#allocation6], %s1737_s29, %s1737_s29, %s1738_s30  }
  0x18   :  { %s1479_s16 = scalar_lea.hbm %s2130_s3, 16 }
  0x19   :  { %p1480_p8 = scmp.ne.s32.totalorder %s2130_s3, %s1479_s16  ;;  %p1483_p9 = scmp.lt.u32.totalorder %s1479_s16, %s2130_s3 }
  0x1b   :  { %p1485_p10 = pnand %p1483_p9, %p1480_p8 }
  0x1d   :  { %1488 = shalt.err (!%p1485_p10)
}
  0x1e   :  { %s1489_s23 = scalar_lea.vmem %s1819_s20, 16  ;;  %s1493_s1 = scalar_lea.vmem %s1819_s20, 32 }
  0x1f   :  { %p1490_p11 = scmp.ne.s32.totalorder %s1819_s20, %s1489_s23  ;;  %p1494_p12 = scmp.lt.s32.totalorder %s1819_s20, %s1819_s20 }
  0x20   :  { %p1495_p13 = scmp.lt.s32.totalorder %s1493_s1, %s1489_s23 }
  0x22   :  { %p1496_p0 = por %p1495_p13, %p1494_p12 }
  0x24   :  { %p1497_p1 = pnand %p1496_p0, %p1490_p11 }
  0x26   :  { %1500 = shalt.err (!%p1497_p1)
}
  0x27   :  { %68 = dma.hbm_to_vmem [thread:$0]  %s2130_s3, 16, %s1819_s20, [#allocation9]  }
  0x28   :  { %s1739_s25 = smov [#allocation11]   ;;  %s1740_s27 = smov [#allocation14]  }
  0x29   :  { %s87_s26 = sshll.u32 %s1739_s25, 4  ;;  %s109_s28 = sshll.u32 %s1740_s27, 4  ;;  %s88_s26 = int_to_ptr.vmem [resolvable:$true] %s87_s26  ;;  %s110_s28 = int_to_ptr.vmem [resolvable:$true] %s109_s28 }
  0x2a   :  { %s1501_s14 = scalar_lea.hbm %s2132_s5, 16 }
  0x2b   :  { %p1502_p2 = scmp.ne.s32.totalorder %s2132_s5, %s1501_s14  ;;  %p1505_p3 = scmp.lt.u32.totalorder %s1501_s14, %s2132_s5 }
  0x2d   :  { %p1507_p4 = pnand %p1505_p3, %p1502_p2 }
  0x2f   :  { %1510 = shalt.err (!%p1507_p4)
}
  0x30   :  { %s1511_s3 = scalar_lea.vmem %s88_s26, 16  ;;  %s1515_s20 = scalar_lea.vmem %s88_s26, 32 }
  0x31   :  { %p1512_p5 = scmp.ne.s32.totalorder %s88_s26, %s1511_s3  ;;  %p1516_p6 = scmp.lt.s32.totalorder %s88_s26, %s88_s26 }
  0x32   :  { %p1517_p7 = scmp.lt.s32.totalorder %s1515_s20, %s1511_s3 }
  0x34   :  { %p1518_p8 = por %p1517_p7, %p1516_p6 }
  0x36   :  { %p1519_p9 = pnand %p1518_p8, %p1512_p5 }
  0x38   :  { %1522 = shalt.err (!%p1519_p9)
}
  0x39   :  { %90 = dma.hbm_to_vmem [thread:$0]  %s2132_s5, 16, %s88_s26, [#allocation12]  }
  0x3a   :  { %s1523_s18 = scalar_lea.hbm %s2134_s7, 16 }
  0x3b   :  { %p1524_p10 = scmp.ne.s32.totalorder %s2134_s7, %s1523_s18  ;;  %p1527_p11 = scmp.lt.u32.totalorder %s1523_s18, %s2134_s7 }
  0x3d   :  { %p1529_p12 = pnand %p1527_p11, %p1524_p10 }
  0x3f   :  { %1532 = shalt.err (!%p1529_p12)
}
  0x40   :  { %s1533_s13 = scalar_lea.vmem %s110_s28, 16  ;;  %s1537_s14 = scalar_lea.vmem %s110_s28, 32 }
  0x41   :  { %p1534_p13 = scmp.ne.s32.totalorder %s110_s28, %s1533_s13  ;;  %p1538_p0 = scmp.lt.s32.totalorder %s110_s28, %s110_s28 }
  0x42   :  { %p1539_p1 = scmp.lt.s32.totalorder %s1537_s14, %s1533_s13 }
  0x44   :  { %p1540_p2 = por %p1539_p1, %p1538_p0 }
  0x46   :  { %p1541_p3 = pnand %p1540_p2, %p1534_p13 }
  0x48   :  { %1544 = shalt.err (!%p1541_p3)
}
  0x49   :  { %112 = dma.hbm_to_vmem [thread:$0]  %s2134_s7, 16, %s110_s28, [#allocation15]  }
  0x4a   :  { %s1741_s15 = smov [#allocation17]   ;;  %s1742_s17 = smov [#allocation2]  }
  0x4b   :  { %s131_s16 = sshll.u32 %s1741_s15, 4  ;;  %s28_s19 = sshll.u32 %s1742_s17, 4  ;;  %s132_s16 = int_to_ptr.vmem [resolvable:$true] %s131_s16  ;;  %s1878_s19 = int_to_ptr.vmem [resolvable:$true] %s28_s19 }
  0x4c   :  { %s1545_s21 = scalar_lea.hbm %s2136_s9, 16 }
  0x4d   :  { %p1546_p4 = scmp.ne.s32.totalorder %s2136_s9, %s1545_s21  ;;  %p1549_p5 = scmp.lt.u32.totalorder %s1545_s21, %s2136_s9 }
  0x4f   :  { %p1551_p6 = pnand %p1549_p5, %p1546_p4 }
  0x51   :  { %1554 = shalt.err (!%p1551_p6)
}
  0x52   :  { %s1555_s7 = scalar_lea.vmem %s132_s16, 16  ;;  %s1559_s28 = scalar_lea.vmem %s132_s16, 32 }
  0x53   :  { %p1556_p7 = scmp.ne.s32.totalorder %s132_s16, %s1555_s7  ;;  %p1560_p8 = scmp.lt.s32.totalorder %s132_s16, %s132_s16 }
  0x54   :  { %p1561_p9 = scmp.lt.s32.totalorder %s1559_s28, %s1555_s7 }
  0x56   :  { %p1562_p10 = por %p1561_p9, %p1560_p8 }
  0x58   :  { %p1563_p11 = pnand %p1562_p10, %p1556_p7 }
  0x5a   :  { %1566 = shalt.err (!%p1563_p11)
}
  0x5b   :  { %134 = dma.hbm_to_vmem [thread:$0]  %s2136_s9, 16, %s132_s16, [#allocation18]  }
  0x5c   :  { %s1567_s13 = scalar_lea.hbm %s2127_s0, 128 }
  0x5d   :  { %p1568_p12 = scmp.ne.s32.totalorder %s2127_s0, %s1567_s13  ;;  %p1571_p13 = scmp.lt.u32.totalorder %s1567_s13, %s2127_s0 }
  0x5f   :  { %p1573_p0 = pnand %p1571_p13, %p1568_p12 }
  0x61   :  { %1576 = shalt.err (!%p1573_p0)
}
  0x62   :  { %s1577_s17 = scalar_lea.vmem %s1878_s19, 128  ;;  %p1582_p2 = scmp.lt.s32.totalorder %s1878_s19, %s1878_s19 }
  0x63   :  { %p1578_p1 = scmp.ne.s32.totalorder %s1878_s19, %s1577_s17  ;;  %p1583_p3 = scmp.lt.s32.totalorder %s1577_s17, %s1577_s17 }
  0x65   :  { %p1584_p4 = por %p1583_p3, %p1582_p2 }
  0x67   :  { %p1585_p5 = pnand %p1584_p4, %p1578_p1 }
  0x69   :  { %1588 = shalt.err (!%p1585_p5)
}
  0x6a   :  { %34 = dma.hbm_to_vmem [thread:$0]  %s2127_s0, 128, %s1878_s19, [#allocation3], %s1737_s29, %s1737_s29, %s1738_s30  }
  0x6b   :  { %s1743_s3 = smov [#allocation7]   ;;  %s1744_s21 = smov [#allocation10]  }
  0x6c   :  { %s52_s20 = sshll.u32 %s1743_s3, 4  ;;  %s74_s22 = sshll.u32 %s1744_s21, 4  ;;  %s53_s20 = int_to_ptr.vmem [resolvable:$true] %s52_s20  ;;  %s1912_s22 = int_to_ptr.vmem [resolvable:$true] %s74_s22 }
  0x6d   :  { %s1589_s18 = scalar_lea.hbm %s2129_s2, 256 }
  0x6e   :  { %p1590_p6 = scmp.ne.s32.totalorder %s2129_s2, %s1589_s18  ;;  %p1593_p7 = scmp.lt.u32.totalorder %s1589_s18, %s2129_s2 }
  0x70   :  { %p1595_p8 = pnand %p1593_p7, %p1590_p6 }
  0x72   :  { %1598 = shalt.err (!%p1595_p8)
}
  0x73   :  { %s1599_s0 = scalar_lea.vmem %s53_s20, 256  ;;  %p1604_p10 = scmp.lt.s32.totalorder %s53_s20, %s53_s20 }
  0x74   :  { %p1600_p9 = scmp.ne.s32.totalorder %s53_s20, %s1599_s0  ;;  %p1605_p11 = scmp.lt.s32.totalorder %s1599_s0, %s1599_s0 }
  0x76   :  { %p1606_p12 = por %p1605_p11, %p1604_p10 }
  0x78   :  { %p1607_p13 = pnand %p1606_p12, %p1600_p9 }
  0x7a   :  { %1610 = shalt.err (!%p1607_p13)
}
  0x7b   :  { %58 = dma.hbm_to_vmem [thread:$0]  %s2129_s2, 256, %s53_s20, [#allocation6], %s1737_s29, %s1737_s29, %s1738_s30  }
  0x7c   :  { %s1611_s14 = scalar_lea.hbm %s2131_s4, 256 }
  0x7d   :  { %p1612_p0 = scmp.ne.s32.totalorder %s2131_s4, %s1611_s14  ;;  %p1615_p1 = scmp.lt.u32.totalorder %s1611_s14, %s2131_s4 }
  0x7f   :  { %p1617_p2 = pnand %p1615_p1, %p1612_p0 }
  0x81   :  { %1620 = shalt.err (!%p1617_p2)
}
  0x82   :  { %s1621_s9 = scalar_lea.vmem %s1912_s22, 256  ;;  %p1626_p4 = scmp.lt.s32.totalorder %s1912_s22, %s1912_s22 }
  0x83   :  { %p1622_p3 = scmp.ne.s32.totalorder %s1912_s22, %s1621_s9  ;;  %p1627_p5 = scmp.lt.s32.totalorder %s1621_s9, %s1621_s9 }
  0x85   :  { %p1628_p6 = por %p1627_p5, %p1626_p4 }
  0x87   :  { %p1629_p7 = pnand %p1628_p6, %p1622_p3 }
  0x89   :  { %1632 = shalt.err (!%p1629_p7)
}
  0x8a   :  { %80 = dma.hbm_to_vmem [thread:$0]  %s2131_s4, 256, %s1912_s22, [#allocation9], %s1737_s29, %s1737_s29, %s1738_s30  }
  0x8b   :  { %s1745_s3 = smov [#allocation13]   ;;  %s1746_s21 = smov [#allocation16]  }
  0x8c   :  { %s96_s20 = sshll.u32 %s1745_s3, 4  ;;  %s118_s23 = sshll.u32 %s1746_s21, 4  ;;  %s97_s20 = int_to_ptr.vmem [resolvable:$true] %s96_s20  ;;  %s1949_s23 = int_to_ptr.vmem [resolvable:$true] %s118_s23 }
  0x8d   :  { %s1633_s7 = scalar_lea.hbm %s2133_s6, 256 }
  0x8e   :  { %p1634_p8 = scmp.ne.s32.totalorder %s2133_s6, %s1633_s7  ;;  %p1637_p9 = scmp.lt.u32.totalorder %s1633_s7, %s2133_s6 }
  0x90   :  { %p1639_p10 = pnand %p1637_p9, %p1634_p8 }
  0x92   :  { %1642 = shalt.err (!%p1639_p10)
}
  0x93   :  { %s1643_s4 = scalar_lea.vmem %s97_s20, 256  ;;  %p1648_p12 = scmp.lt.s32.totalorder %s97_s20, %s97_s20 }
  0x94   :  { %p1644_p11 = scmp.ne.s32.totalorder %s97_s20, %s1643_s4  ;;  %p1649_p13 = scmp.lt.s32.totalorder %s1643_s4, %s1643_s4 }
  0x96   :  { %p1650_p0 = por %p1649_p13, %p1648_p12 }
  0x98   :  { %p1651_p1 = pnand %p1650_p0, %p1644_p11 }
  0x9a   :  { %1654 = shalt.err (!%p1651_p1)
}
  0x9b   :  { %102 = dma.hbm_to_vmem [thread:$0]  %s2133_s6, 256, %s97_s20, [#allocation12], %s1737_s29, %s1737_s29, %s1738_s30  }
  0x9c   :  { %s1655_s13 = scalar_lea.hbm %s2135_s8, 256 }
  0x9d   :  { %p1656_p2 = scmp.ne.s32.totalorder %s2135_s8, %s1655_s13  ;;  %p1659_p3 = scmp.lt.u32.totalorder %s1655_s13, %s2135_s8 }
  0x9f   :  { %p1661_p4 = pnand %p1659_p3, %p1656_p2 }
  0xa1   :  { %1664 = shalt.err (!%p1661_p4)
}
  0xa2   :  { %s1665_s17 = scalar_lea.vmem %s1949_s23, 256  ;;  %p1670_p6 = scmp.lt.s32.totalorder %s1949_s23, %s1949_s23 }
  0xa3   :  { %p1666_p5 = scmp.ne.s32.totalorder %s1949_s23, %s1665_s17  ;;  %p1671_p7 = scmp.lt.s32.totalorder %s1665_s17, %s1665_s17 }
  0xa5   :  { %p1672_p8 = por %p1671_p7, %p1670_p6 }
  0xa7   :  { %p1673_p9 = pnand %p1672_p8, %p1666_p5 }
  0xa9   :  { %1676 = shalt.err (!%p1673_p9)
}
  0xaa   :  { %124 = dma.hbm_to_vmem [thread:$0]  %s2135_s8, 256, %s1949_s23, [#allocation15], %s1737_s29, %s1737_s29, %s1738_s30  }
  0xab   :  { %s1747_s2 = smov [#allocation19]   ;;  %s1677_s21 = scalar_lea.hbm %s2137_s10, 128 }
  0xac   :  { %s141_s16 = sshll.u32 %s1747_s2, 4  ;;  %p1678_p10 = scmp.ne.s32.totalorder %s2137_s10, %s1677_s21  ;;  %s142_s16 = int_to_ptr.vmem [resolvable:$true] %s141_s16 }
  0xad   :  { %p1681_p11 = scmp.lt.u32.totalorder %s1677_s21, %s2137_s10 }
  0xaf   :  { %p1683_p12 = pnand %p1681_p11, %p1678_p10 }
  0xb1   :  { %1686 = shalt.err (!%p1683_p12)
}
  0xb2   :  { %s1687_s24 = scalar_lea.vmem %s142_s16, 128  ;;  %p1692_p0 = scmp.lt.s32.totalorder %s142_s16, %s142_s16 }
  0xb3   :  { %p1688_p13 = scmp.ne.s32.totalorder %s142_s16, %s1687_s24  ;;  %p1693_p1 = scmp.lt.s32.totalorder %s1687_s24, %s1687_s24 }
  0xb5   :  { %p1694_p2 = por %p1693_p1, %p1692_p0 }
  0xb7   :  { %p1695_p3 = pnand %p1694_p2, %p1688_p13 }
  0xb9   :  { %1698 = shalt.err (!%p1695_p3)
}
  0xba   :  { %144 = dma.hbm_to_vmem [thread:$0]  %s2137_s10, 128, %s142_s16, [#allocation18]  }
  0xbb   :  { %1721 = dma.done.wait [#allocation3], 128  }
  0xbc   :  { %1722 = vsyncadd [#allocation3], 4294967168 }
  0xbd   :  { %1723 = dma.done.wait [#allocation6], 512  }
  0xbe   :  { %1724 = vsyncadd [#allocation6], 4294966784 }
  0xbf   :  { %1725 = dma.done.wait [#allocation9], 272  }
  0xc0   :  { %1726 = vsyncadd [#allocation9], 4294967024 }
  0xc1   :  { %1727 = dma.done.wait [#allocation12], 272  }
  0xc2   :  { %1728 = vsyncadd [#allocation12], 4294967024 }
  0xc3   :  { %1729 = dma.done.wait [#allocation15], 272  }
  0xc4   :  { %1730 = vsyncadd [#allocation15], 4294967024 }
  0xc5   :  { %1731 = dma.done.wait [#allocation18], 144  }
  0xc6   :  { %1732 = vsyncadd [#allocation18], 4294967152  ;;  %v1748_v0 = vmov 0.0   ;;  %vm1749_vm0 = vmmov 0   ;;  %v1430_v1 = vld [vmem:[#allocation7] sm:$0xff]   ;;  %v1431_v2 = vld [vmem:[#allocation7 + $0x8] sm:$0xff]   ;;  %v179_v27 = vlaneseq }
  0xc7   :  { %1284 = vmatprep.subr.bf16.mxu0 %v1748_v0  ;;  %1288 = vmatprep.mubr.msk.bf16.mxu0 %vm1749_vm0, %v1748_v0  ;;  %v1433_v3 = vld [vmem:[#allocation10] sm:$0xff]   ;;  %v1432_v4 = vld [vmem:[#allocation2] sm:$0xff]   ;;  %vm217_vm1 = vcmask 261120   ;;  %v1434_v5 = vld [vmem:[#allocation10 + $0x8] sm:$0xff]   ;;  %vm426_vm3 = vcmask 1043456   ;;  %s1750_s10 = smov 104  }
  0xc8   :  { %1292 = vmatprep.subr.bf16.mxu1 %v1748_v0  ;;  %1296 = vmatprep.mubr.msk.bf16.mxu1 %vm1749_vm0, %v1748_v0  ;;  %v1435_v6 = vld [vmem:[#allocation13] sm:$0xff]   ;;  %v1436_v7 = vld [vmem:[#allocation13 + $0x8] sm:$0xff]   ;;  %v1211_v16 = vld [vmem:[#allocation11] ss:$0 sm:$0xff]  ;;  %v180_v29 = vshrl.u32 %v179_v27, 7  ;;  %v182_v30 = vand.u32 127, %v179_v27 }
  0xc9   :  { %1285 = vmatpush3.bf16.msra.mxu0 %v1430_v1  ;;  %1293 = vmatpush3.bf16.msra.mxu1 %v1433_v3  ;;  %v1206_v8 = vld [vmem:[#allocation8] ss:$0 sm:$0xff]  ;;  %s1751_s30 = smov 120   ;;  %vm422_vm4 = vcmask 64512   ;;  %s1752_s23 = smov 112   ;;  %vm725_vm5 = vcmask 130048  }
  0xca   :  { %1286 = vmatprep.subr.bf16.mxu0 %v1748_v0  ;;  %1294 = vmatprep.subr.bf16.mxu1 %v1748_v0  ;;  %vm183_vm2 = vcmp.ge.s32.totalorder %v180_v29, %v182_v30  ;;  %v515_v41 = vld [vmem:[#allocation5] sm:$0xf]  ;;  %v1215_v48 = vld [vmem:[#allocation14] ss:$0 sm:$0xff]  ;;  %v613_v62 = vld [vmem:[#allocation5 + $0x8] sm:$0xf] }
  0xcb   :  { %v1205_v40 = vsel %vm183_vm2, 1.0, %v1748_v0  ;;  %v563_v57 = vld [vmem:[#allocation5 + $0x4] sm:$0xf]  ;;  %v663_v1 = vld [vmem:[#allocation5 + $0xc] sm:$0xf]  ;;  %s1753_s25 = smov 8  }
  0xcc   :  { %v186_v44 = vpack.c.bf16 %v1205_v40, %v1205_v40  ;;  %s1754_s0 = smov 16   ;;  %s1755_s4 = smov 24   ;;  %vm727_vm6 = vcmask 195584  }
  0xcd   :  { %1287 = vmatpush3.bf16.msra.mxu0 %v1431_v2  ;;  %1295 = vmatpush3.bf16.msra.mxu1 %v1434_v5  ;;  %s1757_s22 = smov [#allocation20]  }
  0xce   :  { %1300 = vmatprep.subr.bf16.mxu0 %v1748_v0  ;;  %1308 = vmatprep.subr.bf16.mxu1 %v1748_v0  ;;  %s1188_s19 = sshll.u32 %s1757_s22, 4  ;;  %s1189_s19 = int_to_ptr.vmem [resolvable:$true] %s1188_s19 }
  0xcf   :  { %s1699_s27 = scalar_lea.vmem %s1189_s19, 256  ;;  %p1704_p5 = scmp.lt.s32.totalorder %s1189_s19, %s1189_s19 }
  0xd0   :  { %1289 = vmatmul.mubr.msk.bf16.vlgmr.msra.gmra.mrb[0].mxu0 %vm217_vm1, %v1432_v4  ;;  %1297 = vmatmul.mubr.msk.bf16.vlgmr.msra.gmra.mrb[0].mxu1 %vm217_vm1, %v1432_v4  ;;  %p1700_p4 = scmp.ne.s32.totalorder %s1189_s19, %s1699_s27  ;;  %p1705_p6 = scmp.lt.s32.totalorder %s1699_s27, %s1699_s27 }
  0xd1   :  { %1304 = vmatprep.mubr.msk.bf16.mxu0 %vm1749_vm0, %v1748_v0  ;;  %1310 = vmatprep.mubr.msk.bf16.mxu1 %vm1749_vm0, %v1748_v0 }
  0xd2   :  { %1301 = vmatpush3.bf16.msra.mxu0 %v1435_v6  ;;  %p1706_p7 = por %p1705_p6, %p1704_p5 }
  0xd3   :  { %1302 = vmatprep.subr.bf16.mxu0 %v1748_v0 }
  0xd4   :  { %p1707_p8 = pnand %p1706_p7, %p1700_p4 }
  0xd6   :  { %1303 = vmatpush3.bf16.msra.mxu0 %v1436_v7 }
  0xd7   :  { %1320 = vmatprep.subr.bf16.mxu0 %v1748_v0 }
  0xd9   :  { %1305 = vmatmul.mubr.msk.bf16.vlgmr.msra.gmra.mrb[4].mxu0 %vm217_vm1, %v1432_v4 }
  0xda   :  { %1322 = vmatprep.mubr.msk.bf16.mxu0 %vm1749_vm0, %v1748_v0 }
 0x1a3   :  { %v255_v9 = vpop.f32.mrb[0].mxu0  ;;  %v319_v17 = vpop.f32.mrb[0].mxu1 }
 0x1a4   :  { %v256_v10 = vadd.f32 %v1206_v8, %v255_v9  ;;  %v1290_v11 = vpop.f32.mrb[1].mxu0  ;;  %v1298_v18 = vpop.f32.mrb[1].mxu1  ;;  %v320_v28 = vadd.f32 %v1211_v16, %v319_v17 }
 0x1a5   :  { %v258_v12 = vpop.f32.mrb[2].mxu0  ;;  %v322_v21 = vpop.f32.mrb[2].mxu1 }
 0x1a6   :  { %v390_v13 = vmax.f32 %v256_v10, -60.0  ;;  %v259_v14 = vadd.f32 %v1206_v8, %v258_v12  ;;  %v1291_v15 = vpop.f32.mrb[3].mxu0  ;;  %v323_v22 = vadd.f32 %v1211_v16, %v322_v21  ;;  %v1299_v23 = vpop.f32.mrb[3].mxu1 }
 0x1a8   :  { %v392_v19 = vmin.f32 %v390_v13, 30.0  ;;  %v391_v20 = vmax.f32 %v259_v14, -60.0 }
 0x1aa   :  { %v394_v24 = vmul.f32 1.442695, %v392_v19  ;;  %v393_v25 = vmin.f32 %v391_v20, 30.0  ;;  %v1437_v19 = vld [vmem:[#allocation16] sm:$0xff]   ;;  %v1438_v20 = vld [vmem:[#allocation16 + $0x8] sm:$0xff]  }
 0x1ac   :  { %1441 = vpow2.f32 %v394_v24  ;;  %v396_v26 = vmul.f32 1.442695, %v393_v25  ;;  %v383_v46 = vpop.f32.mrb[4].mxu0 }
 0x1ad   :  { %v1306_v47 = vpop.f32.mrb[5].mxu0  ;;  %v384_v4 = vadd.f32 %v1215_v48, %v383_v46 }
 0x1ae   :  { %1443 = vpow2.f32 %v396_v26  ;;  %v386_v49 = vpop.f32.mrb[6].mxu0 }
 0x1af   :  { %v2040_v50 = vadd.f32 %v1215_v48, %v386_v49  ;;  %v1307_v51 = vpop.f32.mrb[7].mxu0  ;;  %v1219_v5 = vmul.f32 -1.442695, %v384_v4 }
 0x1b1   :  { %1445 = vpow2.f32 %v1219_v5  ;;  %v1220_v29 = vmul.f32 -1.442695, %v2040_v50 }
 0x1b6   :  { %v1442_v31 = vpop.eup %1441 }
 0x1b7   :  { %v398_v32 = vmul.f32 %v1442_v31, %v320_v28  ;;  %v418_v33 = vpack.c.bf16 %v1442_v31, %v1442_v31 }
 0x1b8   :  { %v1444_v34 = vpop.eup %1443 }
 0x1b9   :  { %v1243_v35 = vpack.c.bf16 %v398_v32, %v398_v32  ;;  %v2019_v36 = vmul.f32 %v1444_v34, %v323_v22  ;;  %v419_v37 = vunpack.c.l.bf16 %v418_v33  ;;  %v471_v45 = vsel %vm426_vm3, %v418_v33, 0 }
 0x1ba   :  { %v805_v52 = vpack.c.bf16 %v1444_v34, %v1444_v34 }
 0x1bb   :  { %664 = vrot.lane.b32.xlu1 %v1243_v35, %s1750_s10  ;;  %564 = vrot.lane.b32.xlu0 %v1243_v35, %s1751_s30  ;;  %v520_v38 = vsel %vm426_vm3, %v1243_v35, 0  ;;  %v420_v39 = vsub.f32 %v1442_v31, %v419_v37  ;;  %v1446_v10 = vpop.eup %1445  ;;  %v1244_v28 = vpack.c.bf16 %v2019_v36, %v2019_v36 }
 0x1bc   :  { %1321 = vmatpush3.bf16.msra.mxu0 %v520_v38  ;;  %v806_v55 = vunpack.c.l.bf16 %v805_v52  ;;  %v853_v3 = vsel %vm426_vm3, %v805_v52, 0  ;;  %v407_v11 = vadd.f32 1.0, %v1446_v10 }
 0x1bd   :  { %v421_v42 = vpack.c.bf16 %v420_v39, %v420_v39  ;;  %1326 = vmatprep.subr.bf16.mxu0 %v1748_v0 }
 0x1be   :  { %v807_v61 = vsub.f32 %v1444_v34, %v806_v55  ;;  %1447 = vrcp.f32 %v407_v11  ;;  %v993_v55 = vld [vmem:[#allocation5 + $0x8] sm:$0xf] }
 0x1bf   :  { %614 = vrot.lane.b32.xlu0 %v1243_v35, %s1752_s23  ;;  %v428_v43 = vsel %vm426_vm3, %v421_v42, 0  ;;  %1323 = vmatmul.mubr.msk.bf16.vlgmr.msra.gmra.mrb[8].mxu0 %vm422_vm4, %v515_v41 }
 0x1c0   :  { %1309 = vmatpush3.bf16.msra.mxu1 %v428_v43  ;;  %1328 = vmatprep.mubr.msk.bf16.mxu0 %vm1749_vm0, %v1748_v0  ;;  %v808_v63 = vpack.c.bf16 %v807_v61, %v807_v61 }
 0x1c1   :  { %1314 = vmatprep.subr.bf16.mxu1 %v1748_v0 }
 0x1c2   :  { %v810_v2 = vsel %vm426_vm3, %v808_v63, 0  ;;  %v1756_v63 = vmov 0  }
 0x1c3   :  { %1311 = vmatmul.mubr.msk.bf16.vlgmr.msra.gmra.mrb[4].mxu1 %vm422_vm4, %v186_v44  ;;  %1428 = vset.pattern.permute.xlu0 %v1756_v63 }
 0x1c4   :  { %1315 = vmatpush3.bf16.msra.mxu1 %v471_v45  ;;  %1316 = vmatprep.mubr.msk.bf16.mxu1 %vm1749_vm0, %v1748_v0 }
 0x1c5   :  { %1332 = vmatprep.subr.bf16.mxu1 %v1748_v0  ;;  %1429 = vset.pattern.permute.xlu1 %v1756_v63 }
 0x1c8   :  { %v1448_v16 = vpop.eup %1447 }
 0x1cf   :  { %1317 = vmatmul.mubr.msk.bf16.vlgmr.msra.gmra.mrb[4].mxu1 %vm422_vm4, %v186_v44 }
 0x1d0   :  { %1334 = vmatprep.mubr.msk.bf16.mxu1 %vm1749_vm0, %v1748_v0 }
 0x22d   :  { %v565_v53 = vpop.permute.xlu0 %564  ;;  %v665_v56 = vpop.permute.xlu1 %664 }
 0x22e   :  { %v570_v54 = vsel %vm426_vm3, %v565_v53, 0  ;;  %v670_v59 = vsel %vm426_vm3, %v665_v56, 0 }
 0x22f   :  { %1327 = vmatpush3.bf16.msra.mxu0 %v570_v54  ;;  %v902_v54 = vsel %vm426_vm3, %v1244_v28, 0 }
 0x230   :  { %1338 = vmatprep.subr.bf16.mxu0 %v1748_v0 }
 0x231   :  { %v615_v58 = vpop.permute.xlu0 %614 }
 0x232   :  { %v620_v60 = vsel %vm426_vm3, %v615_v58, 0  ;;  %1329 = vmatmul.mubr.msk.bf16.vlgmr.msra.gmra.mrb[12].mxu0 %vm422_vm4, %v563_v57  ;;  %v897_v57 = vld [vmem:[#allocation5] sm:$0xf] }
 0x233   :  { %1333 = vmatpush3.bf16.msra.mxu1 %v620_v60  ;;  %1339 = vmatpush3.bf16.msra.mxu0 %v670_v59  ;;  %v944_v60 = vld [vmem:[#allocation5 + $0x4] sm:$0xf] }
 0x234   :  { %1340 = vmatprep.mubr.msk.bf16.mxu0 %vm1749_vm0, %v1748_v0  ;;  %1352 = vmatprep.subr.bf16.mxu0 %v1748_v0 }
 0x235   :  { %1344 = vmatprep.subr.bf16.mxu1 %v1748_v0 }
 0x236   :  { %1335 = vmatmul.mubr.msk.bf16.vlgmr.msra.gmra.mrb[8].mxu1 %vm422_vm4, %v613_v62  ;;  %v1042_v62 = vld [vmem:[#allocation5 + $0xc] sm:$0xf] }
 0x237   :  { %1348 = vmatprep.mubr.msk.bf16.mxu1 %vm1749_vm0, %v1748_v0  ;;  %1345 = vmatpush3.bf16.msra.mxu1 %v1437_v19 }
 0x238   :  { %1346 = vmatprep.subr.bf16.mxu1 %v1748_v0 }
 0x23a   :  { %1341 = vmatmul.mubr.msk.bf16.vlgmr.msra.gmra.mrb[16].mxu0 %vm422_vm4, %v663_v1 }
 0x23b   :  { %1353 = vmatpush3.bf16.msra.mxu0 %v810_v2  ;;  %1354 = vmatprep.mubr.msk.bf16.mxu0 %vm1749_vm0, %v1748_v0 }
 0x23c   :  { %1358 = vmatprep.subr.bf16.mxu0 %v1748_v0  ;;  %1347 = vmatpush3.bf16.msra.mxu1 %v1438_v20 }
 0x23d   :  { %1364 = vmatprep.subr.bf16.mxu1 %v1748_v0 }
 0x242   :  { %1355 = vmatmul.mubr.msk.bf16.vlgmr.msra.gmra.mrb[20].mxu0 %vm422_vm4, %v186_v44 }
 0x243   :  { %1359 = vmatpush3.bf16.msra.mxu0 %v853_v3  ;;  %1360 = vmatprep.mubr.msk.bf16.mxu0 %vm1749_vm0, %v1748_v0 }
 0x244   :  { %1376 = vmatprep.subr.bf16.mxu0 %v1748_v0 }
 0x24e   :  { %1361 = vmatmul.mubr.msk.bf16.vlgmr.msra.gmra.mrb[20].mxu0 %vm422_vm4, %v186_v44 }
 0x24f   :  { %1378 = vmatprep.mubr.msk.bf16.mxu0 %vm1749_vm0, %v1748_v0 }
 0x292   :  { %v556_v6 = vpop.f32.mrb[8].mxu0 }
 0x293   :  { %v1324_v7 = vpop.f32.mrb[9].mxu0 }
 0x294   :  { %v559_v8 = vpop.f32.mrb[10].mxu0  ;;  %v797_v7 = vld [vmem:[#allocation19] sm:$0xff] }
 0x295   :  { %v1325_v9 = vpop.f32.mrb[11].mxu0 }
 0x2a2   :  { %v507_v12 = vpop.f32.mrb[4].mxu1 }
 0x2a3   :  { %1449 = vrcp.f32 %v507_v12  ;;  %v1318_v13 = vpop.f32.mrb[5].mxu1  ;;  %v1439_v12 = vld [vmem:[#allocation16] sm:$0xff]  }
 0x2a4   :  { %v510_v14 = vpop.f32.mrb[6].mxu1  ;;  %1451 = vpow2.f32 %v1220_v29 }
 0x2a5   :  { %v1319_v15 = vpop.f32.mrb[7].mxu1 }
 0x2a6   :  { %v1440_v15 = vld [vmem:[#allocation16 + $0x8] sm:$0xff]  }
 0x2ad   :  { %v1450_v17 = vpop.eup %1449 }
 0x2ae   :  { %v514_v18 = vmul.f32 %v1450_v17, %v1448_v16  ;;  %v1452_v35 = vpop.eup %1451 }
 0x2af   :  { %v408_v37 = vadd.f32 1.0, %v1452_v35 }
 0x2b1   :  { %1453 = vrcp.f32 %v408_v37 }
 0x2bb   :  { %v1454_v41 = vpop.eup %1453 }
 0x305   :  { %v606_v21 = vpop.f32.mrb[12].mxu0 }
 0x306   :  { %713 = vrot.lane.b32.xlu1 %v606_v21, %s1753_s25  ;;  %v1330_v22 = vpop.f32.mrb[13].mxu0 }
 0x307   :  { %v609_v23 = vpop.f32.mrb[14].mxu0 }
 0x308   :  { %v1331_v24 = vpop.f32.mrb[15].mxu0 }
 0x309   :  { %v656_v25 = vpop.f32.mrb[8].mxu1 }
 0x30a   :  { %717 = vrot.lane.b32.xlu0 %v656_v25, %s1754_s0  ;;  %v1336_v26 = vpop.f32.mrb[9].mxu1  ;;  %v1229_v25 = vld [vmem:[#allocation17] ss:$0 sm:$0xff] }
 0x30b   :  { %v659_v27 = vpop.f32.mrb[10].mxu1 }
 0x30c   :  { %v1337_v30 = vpop.f32.mrb[11].mxu1 }
 0x30d   :  { %v706_v31 = vpop.f32.mrb[16].mxu0 }
 0x30e   :  { %945 = vrot.lane.b32.xlu0 %v1244_v28, %s1751_s30  ;;  %721 = vrot.lane.b32.xlu1 %v706_v31, %s1755_s4  ;;  %v1342_v32 = vpop.f32.mrb[17].mxu0 }
 0x30f   :  { %v709_v33 = vpop.f32.mrb[18].mxu0 }
 0x310   :  { %v1343_v34 = vpop.f32.mrb[19].mxu0 }
 0x312   :  { %1043 = vrot.lane.b32.xlu0 %v1244_v28, %s1750_s10  ;;  %994 = vrot.lane.b32.xlu1 %v1244_v28, %s1752_s23 }
 0x321   :  { %v889_v36 = vpop.f32.mrb[20].mxu0 }
 0x322   :  { %1455 = vrcp.f32 %v889_v36  ;;  %v1362_v38 = vpop.f32.mrb[21].mxu0 }
 0x323   :  { %v892_v39 = vpop.f32.mrb[22].mxu0 }
 0x324   :  { %v1363_v40 = vpop.f32.mrb[23].mxu0 }
 0x32c   :  { %v1456_v42 = vpop.eup %1455 }
 0x32d   :  { %v2078_v43 = vmul.f32 %v1456_v42, %v1454_v41 }
 0x378   :  { %v714_v44 = vpop.permute.xlu1 %713 }
 0x379   :  { %v724_v46 = vsel %vm422_vm4, %v556_v6, %v714_v44 }
 0x37c   :  { %v718_v45 = vpop.permute.xlu0 %717 }
 0x37d   :  { %v726_v47 = vsel %vm725_vm5, %v724_v46, %v718_v45 }
 0x380   :  { %v722_v48 = vpop.permute.xlu1 %721  ;;  %v946_v56 = vpop.permute.xlu0 %945 }
 0x381   :  { %v728_v49 = vsel %vm727_vm6, %v726_v47, %v722_v48  ;;  %v951_v58 = vsel %vm426_vm3, %v946_v56, 0 }
 0x382   :  { %v729_v50 = vmul.f32 %v728_v49, %v514_v18 }
 0x384   :  { %v730_v51 = vpack.c.bf16 %v729_v50, %v729_v50  ;;  %v995_v52 = vpop.permute.xlu1 %994  ;;  %v1044_v59 = vpop.permute.xlu0 %1043 }
 0x385   :  { %v1000_v53 = vsel %vm426_vm3, %v995_v52, 0  ;;  %v1049_v61 = vsel %vm426_vm3, %v1044_v59, 0 }
 0x386   :  { %1349 = vmatmul.mubr.msk.bf16.vlgmr.msra.gmra.mrb[12].mxu1 %vm217_vm1, %v730_v51  ;;  %1377 = vmatpush3.bf16.msra.mxu0 %v1000_v53 }
 0x387   :  { %1365 = vmatpush3.bf16.msra.mxu1 %v902_v54  ;;  %1366 = vmatprep.mubr.msk.bf16.mxu1 %vm1749_vm0, %v1748_v0 }
 0x388   :  { %1370 = vmatprep.subr.bf16.mxu1 %v1748_v0  ;;  %1388 = vmatprep.subr.bf16.mxu0 %v1748_v0 }
 0x389   :  { %1379 = vmatmul.mubr.msk.bf16.vlgmr.msra.gmra.mrb[24].mxu0 %vm422_vm4, %v993_v55 }
 0x38a   :  { %1392 = vmatprep.mubr.msk.bf16.mxu0 %vm1749_vm0, %v1748_v0  ;;  %1389 = vmatpush3.bf16.msra.mxu0 %v1439_v12 }
 0x38b   :  { %1390 = vmatprep.subr.bf16.mxu0 %v1748_v0 }
 0x38e   :  { %1367 = vmatmul.mubr.msk.bf16.vlgmr.msra.gmra.mrb[16].mxu1 %vm422_vm4, %v897_v57  ;;  %1391 = vmatpush3.bf16.msra.mxu0 %v1440_v15 }
 0x38f   :  { %1371 = vmatpush3.bf16.msra.mxu1 %v951_v58  ;;  %1372 = vmatprep.mubr.msk.bf16.mxu1 %vm1749_vm0, %v1748_v0 }
 0x390   :  { %1382 = vmatprep.subr.bf16.mxu1 %v1748_v0 }
 0x396   :  { %1373 = vmatmul.mubr.msk.bf16.vlgmr.msra.gmra.mrb[20].mxu1 %vm422_vm4, %v944_v60 }
 0x397   :  { %1383 = vmatpush3.bf16.msra.mxu1 %v1049_v61  ;;  %1384 = vmatprep.mubr.msk.bf16.mxu1 %vm1749_vm0, %v1748_v0 }
 0x39e   :  { %1385 = vmatmul.mubr.msk.bf16.vlgmr.msra.gmra.mrb[24].mxu1 %vm422_vm4, %v1042_v62 }
 0x459   :  { %v791_v1 = vpop.f32.mrb[12].mxu1 }
 0x45a   :  { %v1350_v2 = vpop.f32.mrb[13].mxu1  ;;  %v792_v27 = vadd.f32 %v1229_v25, %v791_v1 }
 0x45b   :  { %v794_v3 = vpop.f32.mrb[14].mxu1 }
 0x45c   :  { %v1351_v4 = vpop.f32.mrb[15].mxu1  ;;  %v1036_v5 = vpop.f32.mrb[24].mxu0 }
 0x45d   :  { %1096 = vrot.lane.b32.xlu0 %v1036_v5, %s1754_s0  ;;  %v1380_v6 = vpop.f32.mrb[25].mxu0 }
 0x45e   :  { %v1039_v8 = vpop.f32.mrb[26].mxu0 }
 0x45f   :  { %v1381_v9 = vpop.f32.mrb[27].mxu0 }
 0x461   :  { %800 = vperm.xlu0 %1428, %v797_v7   ;;  %v938_v10 = vpop.f32.mrb[16].mxu1 }
 0x462   :  { %v1368_v11 = vpop.f32.mrb[17].mxu1 }
 0x463   :  { %v941_v13 = vpop.f32.mrb[18].mxu1 }
 0x464   :  { %v1369_v14 = vpop.f32.mrb[19].mxu1 }
 0x469   :  { %v987_v16 = vpop.f32.mrb[20].mxu1 }
 0x46a   :  { %1092 = vrot.lane.b32.xlu1 %v987_v16, %s1753_s25  ;;  %v1374_v17 = vpop.f32.mrb[21].mxu1 }
 0x46b   :  { %v990_v18 = vpop.f32.mrb[22].mxu1 }
 0x46c   :  { %v1375_v19 = vpop.f32.mrb[23].mxu1 }
 0x471   :  { %v1085_v20 = vpop.f32.mrb[24].mxu1 }
 0x472   :  { %1100 = vrot.lane.b32.xlu1 %v1085_v20, %s1755_s4  ;;  %v1386_v21 = vpop.f32.mrb[25].mxu1 }
 0x473   :  { %v1088_v22 = vpop.f32.mrb[26].mxu1 }
 0x474   :  { %v1387_v23 = vpop.f32.mrb[27].mxu1 }
 0x476   :  { %1177 = vperm.xlu1 %1429, %v797_v7  }
 0x4cf   :  { %v1097_v24 = vpop.permute.xlu0 %1096 }
 0x4dc   :  { %v1093_v26 = vpop.permute.xlu1 %1092 }
 0x4dd   :  { %v1103_v28 = vsel %vm422_vm4, %v938_v10, %v1093_v26 }
 0x4de   :  { %v1104_v30 = vsel %vm725_vm5, %v1103_v28, %v1097_v24 }
 0x4e0   :  { %v801_v0 = vpop.permute.xlu0 %800 }
 0x4e1   :  { %v803_v29 = vmul.f32 %v801_v0, %v792_v27 }
 0x4e3   :  { %804 = vst.msk [vmem:[#allocation20] sm:$0xff] %vm217_vm1, %v803_v29 }
 0x4e4   :  { %v1101_v31 = vpop.permute.xlu1 %1100 }
 0x4e5   :  { %v1105_v32 = vsel %vm727_vm6, %v1104_v30, %v1101_v31 }
 0x4e6   :  { %v1106_v33 = vmul.f32 %v1105_v32, %v2078_v43 }
 0x4e8   :  { %v1107_v34 = vpack.c.bf16 %v1106_v33, %v1106_v33 }
 0x4ea   :  { %1393 = vmatmul.mubr.msk.bf16.vlgmr.msra.gmra.mrb[28].mxu0 %vm217_vm1, %v1107_v34 }
 0x4f5   :  { %v1178_v37 = vpop.permute.xlu1 %1177 }
 0x5bd   :  { %v1168_v35 = vpop.f32.mrb[28].mxu0 }
 0x5be   :  { %v1169_v36 = vadd.f32 %v1229_v25, %v1168_v35  ;;  %v1394_v38 = vpop.f32.mrb[29].mxu0 }
 0x5bf   :  { %v1171_v39 = vpop.f32.mrb[30].mxu0 }
 0x5c0   :  { %v1180_v40 = vmul.f32 %v1178_v37, %v1169_v36  ;;  %v1395_v41 = vpop.f32.mrb[31].mxu0 }
 0x5c2   :  { %1182 = vst.msk [vmem:[#allocation20 + $0x8] sm:$0xff] %vm217_vm1, %v1180_v40 }
 0x5c3   :  { %1710 = shalt.err (!%p1707_p8)
}
 0x5c4   :  { %s1711_s14 = scalar_lea.hbm %s2138_s11, 256 }
 0x5c5   :  { %p1712_p9 = scmp.ne.s32.totalorder %s2138_s11, %s1711_s14  ;;  %p1715_p10 = scmp.lt.u32.totalorder %s1711_s14, %s2138_s11 }
 0x5c7   :  { %p1717_p11 = pnand %p1715_p10, %p1712_p9 }
 0x5c9   :  { %1720 = shalt.err (!%p1717_p11)
}
 0x5ca   :  { %s1758_s6 = smov 128  }
 0x5cb   :  { %1194 = dma.vmem_to_hbm [thread:$0]  %s1189_s19, 256, %s2138_s11, [#allocation4], %s1758_s6, %s1758_s6, %s1753_s25  }
 0x5cc   :  { %1733 = dma.done.wait [#allocation4], 256  }
 0x5cd   :  { %1734 = vsyncadd [#allocation4], 4294967040 }
 0x5ce   :  { %1198 = vsyncpa [#allocation3], 1 }
 0x5cf   :  { %1199 = vsyncpa [#allocation6], 1 }
 0x5d0   :  { %1200 = vsyncpa [#allocation9], 1 }
 0x5d1   :  { %1201 = vsyncpa [#allocation12], 1 }
 0x5d2   :  { %1202 = vsyncpa [#allocation15], 1 }
 0x5d3   :  { %1203 = vsyncpa [#allocation18], 1 }
 0x5d4   :  { %1204 = vsyncpa [#allocation4], 1 }

</bundles_post_ra>
